<compile_context>
chip_gen: v5e
topology: v5e:2x2
jax: 0.10.0
libtpu: 0.0.40
codegen_flags: <defaults>
</compile_context>

<pallas_src>
import functools
import math

import jax
import jax.numpy as jnp
from jax.experimental import pallas as pl
from jax.experimental.pallas import tpu as pltpu

EMBED = 32
HEADS = 4
HEAD_DIM = EMBED // HEADS
N_BATCH = 2
SEQ = 8

# Set to jnp.bfloat16 on v6e/v7x at scaled sizes (softmax stays f32 either way).
MXU_DTYPE = jnp.float32


# ---------------------------------------------------------------------------
# Fused MHA kernel: one grid step == one batch element, everything in VMEM.
# ---------------------------------------------------------------------------
def fused_mha_kernel(q_ref, k_ref, v_ref, bias_ref, wqkv_ref, bqkv_ref,
                     wo_ref, bo_ref, o_ref, *, heads):
    # q/k/v: (1, L, E) lane-dense activations for this batch element
    # bias : (1, 1, Lk) additive mask bias (0 valid / -1e20 masked)
    # wqkv : (E, 3E) = [Wq*1/sqrt(D) | Wk | Wv] in (in, out) layout; bqkv: (1, 3E)
    # wo   : (E, E) in (in, out) layout; bo: (1, E)
    Lq = q_ref.shape[1]
    Lk = k_ref.shape[1]
    Lv = v_ref.shape[1]
    E = q_ref.shape[2]
    D = E // heads

    xq = q_ref[0]            # (Lq, E)
    xk = k_ref[0]            # (Lk, E)
    xv = v_ref[0]            # (Lv, E)
    bias = bias_ref[0]       # (1, Lk)

    # --- fused QKV projection: one MXU matmul over the row-stacked inputs ----
    x = jnp.concatenate([xq, xk, xv], axis=0)                       # (Lq+Lk+Lv, E)
    qkv = jnp.dot(x.astype(MXU_DTYPE), wqkv_ref[...].astype(MXU_DTYPE),
                  preferred_element_type=jnp.float32)               # (Lq+Lk+Lv, 3E)
    b_all = bqkv_ref[...]                                           # (1, 3E)

    q = qkv[0:Lq, 0:E] + b_all[:, 0:E]              # already scaled by 1/sqrt(D)
    k = qkv[Lq:Lq + Lk, E:2 * E] + b_all[:, E:2 * E]
    v = qkv[Lq + Lk:Lq + Lk + Lv, 2 * E:3 * E] + b_all[:, 2 * E:3 * E]

    # --- per-head attention (heads is small & static -> unrolled) ------------
    # Heads are contiguous column groups of the lane axis; static slices keep
    # everything 2-D and lane-resident (no cross-lane reshapes of E).
    head_outs = []
    for h in range(heads):
        cs = slice(h * D, (h + 1) * D)
        s = jnp.einsum("qd,kd->qk", q[:, cs], k[:, cs],
                       preferred_element_type=jnp.float32)          # (Lq, Lk)
        s = s + bias                                                 # additive mask
        s = s - jnp.max(s, axis=-1, keepdims=True)
        p = jnp.exp(s)
        p = p * pl.reciprocal(jnp.sum(p, axis=-1, keepdims=True), approx=True)
        head_outs.append(
            jnp.dot(p.astype(MXU_DTYPE), v[:, cs].astype(MXU_DTYPE),
                    preferred_element_type=jnp.float32))             # (Lq, D)

    attn_out = jnp.concatenate(head_outs, axis=1)                    # (Lq, E)

    # --- output projection, stored lane-dense --------------------------------
    out = jnp.dot(attn_out.astype(MXU_DTYPE), wo_ref[...].astype(MXU_DTYPE),
                  preferred_element_type=jnp.float32) + bo_ref[...]
    o_ref[0] = out.astype(o_ref.dtype)


def mha_forward(prepared, query, keys, values, mask, heads=HEADS):
    """query/keys/values: (N, L, E); mask: (N, key_len) with 0 == masked (or None)."""
    N, Lq, E = query.shape
    Lk = keys.shape[1]
    Lv = values.shape[1]
    assert Lk == Lv, "key_len must equal value_len for attention"

    if mask is None:
        bias = jnp.zeros((N, 1, Lk), jnp.float32)
    else:
        bias = jnp.where(mask == 0, jnp.float32(-1e20),
                         jnp.float32(0.0))[:, None, :].astype(jnp.float32)

    kernel = functools.partial(fused_mha_kernel, heads=heads)
    return pl.pallas_call(
        kernel,
        out_shape=jax.ShapeDtypeStruct((N, Lq, E), query.dtype),
        grid=(N,),
        in_specs=[
            pl.BlockSpec((1, Lq, E), lambda n: (n, 0, 0)),
            pl.BlockSpec((1, Lk, E), lambda n: (n, 0, 0)),
            pl.BlockSpec((1, Lv, E), lambda n: (n, 0, 0)),
            pl.BlockSpec((1, 1, Lk), lambda n: (n, 0, 0)),
            pl.BlockSpec((E, 3 * E), lambda n: (0, 0)),
            pl.BlockSpec((1, 3 * E), lambda n: (0, 0)),
            pl.BlockSpec((E, E), lambda n: (0, 0)),
            pl.BlockSpec((1, E), lambda n: (0, 0)),
        ],
        out_specs=pl.BlockSpec((1, Lq, E), lambda n: (n, 0, 0)),
        compiler_params=pltpu.CompilerParams(
            # batch axis shards across v7x's 2 TensorCores; cheap serial loop elsewhere
            dimension_semantics=("parallel",)),
    )(query, keys, values, bias,
      prepared["w_qkv"], prepared["b_qkv"], prepared["w_o"], prepared["b_o"])


# ---------------------------------------------------------------------------
# Parameters (PyTorch nn.Linear layout) + one-time kernel-friendly prep
# ---------------------------------------------------------------------------
def init_params(key, embed_size):
    bound = 1.0 / math.sqrt(embed_size)
    ks = jax.random.split(key, 8)

    def u(k, shape):
        return jax.random.uniform(k, shape, jnp.float32, minval=-bound, maxval=bound)

    return {
        "wv": u(ks[0], (embed_size, embed_size)), "bv": u(ks[1], (embed_size,)),
        "wk": u(ks[2], (embed_size, embed_size)), "bk": u(ks[3], (embed_size,)),
        "wq": u(ks[4], (embed_size, embed_size)), "bq": u(ks[5], (embed_size,)),
        "wo": u(ks[6], (embed_size, embed_size)), "bo": u(ks[7], (embed_size,)),
    }


def prepare_params(params, heads):
    """One-time transform: transpose to (in, out), fuse QKV, fold 1/sqrt(D) into Q."""
    E = params["wq"].shape[0]
    D = E // heads
    scale = jnp.float32(1.0 / math.sqrt(D))
    w_qkv = jnp.concatenate(
        [params["wq"].T * scale, params["wk"].T, params["wv"].T], axis=1)   # (E, 3E)
    b_qkv = jnp.concatenate(
        [params["bq"] * scale, params["bk"], params["bv"]], axis=0).reshape(1, 3 * E)
    return {
        "w_qkv": w_qkv,
        "b_qkv": b_qkv,
        "w_o": params["wo"].T,                 # (E, E) in (in, out) layout
        "b_o": params["bo"].reshape(1, E),
    }


def mha_reference(params, query, keys, values, mask, heads=HEADS):
    """Pure-JAX reference replicating the PyTorch forward pass exactly."""
    N, Lq, E = query.shape
    Lk = keys.shape[1]
    Lv = values.shape[1]
    D = E // heads
    v = values @ params["wv"].T + params["bv"]
    k = keys @ params["wk"].T + params["bk"]
    q = query @ params["wq"].T + params["bq"]
    v = v.reshape(N, Lv, heads, D).transpose(0, 2, 1, 3)
    k = k.reshape(N, Lk, heads, D).transpose(0, 2, 1, 3)
    q = q.reshape(N, Lq, heads, D).transpose(0, 2, 1, 3)
    energy = jnp.einsum("nhqd,nhkd->nhqk", q, k)
    m = mask[:, None, None, :]
    energy = jnp.where(m == 0, jnp.float32(-1e20), energy)
    attn = jax.nn.softmax(energy / math.sqrt(D), axis=-1)
    out = jnp.einsum("nhqk,nhkd->nhqd", attn, v)
    out = out.transpose(0, 2, 1, 3).reshape(N, Lq, E)
    return out @ params["wo"].T + params["bo"]


if __name__ == "__main__":
    key = jax.random.PRNGKey(0)
    kp, kq, kk, kv = jax.random.split(key, 4)

    params = init_params(kp, EMBED)
    prepared = prepare_params(params, HEADS)

    query = jax.random.normal(kq, (N_BATCH, SEQ, EMBED), jnp.float32)
    keys = jax.random.normal(kk, (N_BATCH, SEQ, EMBED), jnp.float32)
    values = jax.random.normal(kv, (N_BATCH, SEQ, EMBED), jnp.float32)
    # mask: (N, key_len); 0 => masked out
    mask = jnp.ones((N_BATCH, SEQ), jnp.float32).at[:, -2:].set(0.0)

    out = mha_forward(prepared, query, keys, values, mask)
    out = jax.block_until_ready(out)

    ref = mha_reference(params, query, keys, values, mask)
    assert out.shape == (N_BATCH, SEQ, EMBED)
    assert jnp.allclose(out, ref, rtol=2e-3, atol=2e-3), "mismatch vs reference"

    print("KERNEL_OK")
</pallas_src>

<mosaic_0001>
module attributes {stable_mosaic.version = 11 : i64} {
  func.func @fused_mha_kernel(%arg0: i32, %arg1: memref<1x8x32xf32, #tpu.memory_space<vmem>>, %arg2: memref<1x8x32xf32, #tpu.memory_space<vmem>>, %arg3: memref<1x8x32xf32, #tpu.memory_space<vmem>>, %arg4: memref<1x1x8xf32, #tpu.memory_space<vmem>>, %arg5: memref<32x96xf32, #tpu.memory_space<vmem>>, %arg6: memref<1x96xf32, #tpu.memory_space<vmem>>, %arg7: memref<32x32xf32, #tpu.memory_space<vmem>>, %arg8: memref<1x32xf32, #tpu.memory_space<vmem>>, %arg9: memref<1x8x32xf32, #tpu.memory_space<vmem>>) attributes {dimension_semantics = [#tpu.dimension_semantics<parallel>], iteration_bounds = array<i64: 2>, scalar_prefetch = 0 : i64, scratch_operands = 0 : i64, tpu.core_type = #tpu.core_type<tc>, window_params = [{transform_indices = @transform_0, window_bounds = array<i64: 1, 8, 32>}, {transform_indices = @transform_1, window_bounds = array<i64: 1, 8, 32>}, {transform_indices = @transform_2, window_bounds = array<i64: 1, 8, 32>}, {transform_indices = @transform_3, window_bounds = array<i64: 1, 1, 8>}, {pipeline_mode = #tpu.pipeline_mode<synchronous>, transform_indices = @transform_4, window_bounds = array<i64: 32, 96>}, {pipeline_mode = #tpu.pipeline_mode<synchronous>, transform_indices = @transform_5, window_bounds = array<i64: 1, 96>}, {pipeline_mode = #tpu.pipeline_mode<synchronous>, transform_indices = @transform_6, window_bounds = array<i64: 32, 32>}, {pipeline_mode = #tpu.pipeline_mode<synchronous>, transform_indices = @transform_7, window_bounds = array<i64: 1, 32>}, {transform_indices = @transform_8, window_bounds = array<i64: 1, 8, 32>}]} {
    %c0 = arith.constant 0 : index
    %c0_0 = arith.constant 0 : index
    %c0_1 = arith.constant 0 : index
    %0 = vector.load %arg1[%c0, %c0_0, %c0_1] : memref<1x8x32xf32, #tpu.memory_space<vmem>>, vector<1x8x32xf32>
    %1 = vector.shape_cast %0 : vector<1x8x32xf32> to vector<8x32xf32>
    %c0_2 = arith.constant 0 : index
    %c0_3 = arith.constant 0 : index
    %c0_4 = arith.constant 0 : index
    %2 = vector.load %arg2[%c0_2, %c0_3, %c0_4] : memref<1x8x32xf32, #tpu.memory_space<vmem>>, vector<1x8x32xf32>
    %3 = vector.shape_cast %2 : vector<1x8x32xf32> to vector<8x32xf32>
    %c0_5 = arith.constant 0 : index
    %c0_6 = arith.constant 0 : index
    %c0_7 = arith.constant 0 : index
    %4 = vector.load %arg3[%c0_5, %c0_6, %c0_7] : memref<1x8x32xf32, #tpu.memory_space<vmem>>, vector<1x8x32xf32>
    %5 = vector.shape_cast %4 : vector<1x8x32xf32> to vector<8x32xf32>
    %c0_8 = arith.constant 0 : index
    %c0_9 = arith.constant 0 : index
    %c0_10 = arith.constant 0 : index
    %6 = vector.load %arg4[%c0_8, %c0_9, %c0_10] : memref<1x1x8xf32, #tpu.memory_space<vmem>>, vector<1x1x8xf32>
    %7 = vector.shape_cast %6 : vector<1x1x8xf32> to vector<1x8xf32>
    %8 = tpu.concatenate %1, %3, %5 in 0 : vector<8x32xf32>, vector<8x32xf32>, vector<8x32xf32> -> vector<24x32xf32>
    %c0_11 = arith.constant 0 : index
    %c0_12 = arith.constant 0 : index
    %9 = vector.load %arg5[%c0_11, %c0_12] : memref<32x96xf32, #tpu.memory_space<vmem>>, vector<32x96xf32>
    %cst = arith.constant dense<0.000000e+00> : vector<24x96xf32>
    %10 = tpu.matmul %8, %9, %cst {dimension_numbers = #tpu.dot_dimension_numbers<[1], [0], [0], [1], [0, 0, 1, 1], [], []>} : vector<24x32xf32>, vector<32x96xf32>, vector<24x96xf32> -> vector<24x96xf32>
    %c0_13 = arith.constant 0 : index
    %c0_14 = arith.constant 0 : index
    %11 = vector.load %arg6[%c0_13, %c0_14] : memref<1x96xf32, #tpu.memory_space<vmem>>, vector<1x96xf32>
    %12 = vector.extract_strided_slice %10 {offsets = [0, 0], sizes = [8, 32], strides = [1, 1]} : vector<24x96xf32> to vector<8x32xf32>
    %13 = vector.extract_strided_slice %11 {offsets = [0, 0], sizes = [1, 32], strides = [1, 1]} : vector<1x96xf32> to vector<1x32xf32>
    %14 = vector.broadcast %13 : vector<1x32xf32> to vector<8x32xf32>
    %15 = arith.addf %12, %14 : vector<8x32xf32>
    %16 = vector.extract_strided_slice %10 {offsets = [8, 32], sizes = [8, 32], strides = [1, 1]} : vector<24x96xf32> to vector<8x32xf32>
    %17 = vector.extract_strided_slice %11 {offsets = [0, 32], sizes = [1, 32], strides = [1, 1]} : vector<1x96xf32> to vector<1x32xf32>
    %18 = vector.broadcast %17 : vector<1x32xf32> to vector<8x32xf32>
    %19 = arith.addf %16, %18 : vector<8x32xf32>
    %20 = vector.extract_strided_slice %10 {offsets = [16, 64], sizes = [8, 32], strides = [1, 1]} : vector<24x96xf32> to vector<8x32xf32>
    %21 = vector.extract_strided_slice %11 {offsets = [0, 64], sizes = [1, 32], strides = [1, 1]} : vector<1x96xf32> to vector<1x32xf32>
    %22 = vector.broadcast %21 : vector<1x32xf32> to vector<8x32xf32>
    %23 = arith.addf %20, %22 : vector<8x32xf32>
    %24 = vector.extract_strided_slice %15 {offsets = [0, 0], sizes = [8, 8], strides = [1, 1]} : vector<8x32xf32> to vector<8x8xf32>
    %25 = vector.extract_strided_slice %19 {offsets = [0, 0], sizes = [8, 8], strides = [1, 1]} : vector<8x32xf32> to vector<8x8xf32>
    "tpu.trace_start"() <{level = 10 : i32, message = "qd,kd->qk"}> : () -> ()
    %cst_15 = arith.constant dense<0.000000e+00> : vector<8x8xf32>
    %26 = tpu.matmul %24, %25, %cst_15 {dimension_numbers = #tpu.dot_dimension_numbers<[1], [1], [0], [0], [0, 0, 1, 0], [], []>} : vector<8x8xf32>, vector<8x8xf32>, vector<8x8xf32> -> vector<8x8xf32>
    "tpu.trace_stop"() : () -> ()
    %27 = vector.broadcast %7 : vector<1x8xf32> to vector<8x8xf32>
    %28 = arith.addf %26, %27 : vector<8x8xf32>
    %cst_16 = arith.constant dense<0xFF800000> : vector<8xf32>
    %29 = vector.multi_reduction <maximumf>, %28, %cst_16 [1] : vector<8x8xf32> to vector<8xf32>
    %30 = vector.shape_cast %29 : vector<8xf32> to vector<8x1xf32>
    %31 = vector.broadcast %30 : vector<8x1xf32> to vector<8x8xf32>
    %32 = arith.subf %28, %31 : vector<8x8xf32>
    %33 = math.exp %32 : vector<8x8xf32>
    %cst_17 = arith.constant dense<0.000000e+00> : vector<8xf32>
    %34 = vector.multi_reduction <add>, %33, %cst_17 [1] : vector<8x8xf32> to vector<8xf32>
    %35 = vector.shape_cast %34 : vector<8xf32> to vector<8x1xf32>
    %36 = tpu.reciprocal %35 {approx = true} : vector<8x1xf32> -> vector<8x1xf32>
    %37 = vector.broadcast %36 : vector<8x1xf32> to vector<8x8xf32>
    %38 = arith.mulf %33, %37 : vector<8x8xf32>
    %39 = vector.extract_strided_slice %23 {offsets = [0, 0], sizes = [8, 8], strides = [1, 1]} : vector<8x32xf32> to vector<8x8xf32>
    %cst_18 = arith.constant dense<0.000000e+00> : vector<8x8xf32>
    %40 = tpu.matmul %38, %39, %cst_18 {dimension_numbers = #tpu.dot_dimension_numbers<[1], [0], [0], [1], [0, 0, 1, 1], [], []>} : vector<8x8xf32>, vector<8x8xf32>, vector<8x8xf32> -> vector<8x8xf32>
    %41 = vector.extract_strided_slice %15 {offsets = [0, 8], sizes = [8, 8], strides = [1, 1]} : vector<8x32xf32> to vector<8x8xf32>
    %42 = vector.extract_strided_slice %19 {offsets = [0, 8], sizes = [8, 8], strides = [1, 1]} : vector<8x32xf32> to vector<8x8xf32>
    "tpu.trace_start"() <{level = 10 : i32, message = "qd,kd->qk"}> : () -> ()
    %cst_19 = arith.constant dense<0.000000e+00> : vector<8x8xf32>
    %43 = tpu.matmul %41, %42, %cst_19 {dimension_numbers = #tpu.dot_dimension_numbers<[1], [1], [0], [0], [0, 0, 1, 0], [], []>} : vector<8x8xf32>, vector<8x8xf32>, vector<8x8xf32> -> vector<8x8xf32>
    "tpu.trace_stop"() : () -> ()
    %44 = vector.broadcast %7 : vector<1x8xf32> to vector<8x8xf32>
    %45 = arith.addf %43, %44 : vector<8x8xf32>
    %cst_20 = arith.constant dense<0xFF800000> : vector<8xf32>
    %46 = vector.multi_reduction <maximumf>, %45, %cst_20 [1] : vector<8x8xf32> to vector<8xf32>
    %47 = vector.shape_cast %46 : vector<8xf32> to vector<8x1xf32>
    %48 = vector.broadcast %47 : vector<8x1xf32> to vector<8x8xf32>
    %49 = arith.subf %45, %48 : vector<8x8xf32>
    %50 = math.exp %49 : vector<8x8xf32>
    %cst_21 = arith.constant dense<0.000000e+00> : vector<8xf32>
    %51 = vector.multi_reduction <add>, %50, %cst_21 [1] : vector<8x8xf32> to vector<8xf32>
    %52 = vector.shape_cast %51 : vector<8xf32> to vector<8x1xf32>
    %53 = tpu.reciprocal %52 {approx = true} : vector<8x1xf32> -> vector<8x1xf32>
    %54 = vector.broadcast %53 : vector<8x1xf32> to vector<8x8xf32>
    %55 = arith.mulf %50, %54 : vector<8x8xf32>
    %56 = vector.extract_strided_slice %23 {offsets = [0, 8], sizes = [8, 8], strides = [1, 1]} : vector<8x32xf32> to vector<8x8xf32>
    %cst_22 = arith.constant dense<0.000000e+00> : vector<8x8xf32>
    %57 = tpu.matmul %55, %56, %cst_22 {dimension_numbers = #tpu.dot_dimension_numbers<[1], [0], [0], [1], [0, 0, 1, 1], [], []>} : vector<8x8xf32>, vector<8x8xf32>, vector<8x8xf32> -> vector<8x8xf32>
    %58 = vector.extract_strided_slice %15 {offsets = [0, 16], sizes = [8, 8], strides = [1, 1]} : vector<8x32xf32> to vector<8x8xf32>
    %59 = vector.extract_strided_slice %19 {offsets = [0, 16], sizes = [8, 8], strides = [1, 1]} : vector<8x32xf32> to vector<8x8xf32>
    "tpu.trace_start"() <{level = 10 : i32, message = "qd,kd->qk"}> : () -> ()
    %cst_23 = arith.constant dense<0.000000e+00> : vector<8x8xf32>
    %60 = tpu.matmul %58, %59, %cst_23 {dimension_numbers = #tpu.dot_dimension_numbers<[1], [1], [0], [0], [0, 0, 1, 0], [], []>} : vector<8x8xf32>, vector<8x8xf32>, vector<8x8xf32> -> vector<8x8xf32>
    "tpu.trace_stop"() : () -> ()
    %61 = vector.broadcast %7 : vector<1x8xf32> to vector<8x8xf32>
    %62 = arith.addf %60, %61 : vector<8x8xf32>
    %cst_24 = arith.constant dense<0xFF800000> : vector<8xf32>
    %63 = vector.multi_reduction <maximumf>, %62, %cst_24 [1] : vector<8x8xf32> to vector<8xf32>
    %64 = vector.shape_cast %63 : vector<8xf32> to vector<8x1xf32>
    %65 = vector.broadcast %64 : vector<8x1xf32> to vector<8x8xf32>
    %66 = arith.subf %62, %65 : vector<8x8xf32>
    %67 = math.exp %66 : vector<8x8xf32>
    %cst_25 = arith.constant dense<0.000000e+00> : vector<8xf32>
    %68 = vector.multi_reduction <add>, %67, %cst_25 [1] : vector<8x8xf32> to vector<8xf32>
    %69 = vector.shape_cast %68 : vector<8xf32> to vector<8x1xf32>
    %70 = tpu.reciprocal %69 {approx = true} : vector<8x1xf32> -> vector<8x1xf32>
    %71 = vector.broadcast %70 : vector<8x1xf32> to vector<8x8xf32>
    %72 = arith.mulf %67, %71 : vector<8x8xf32>
    %73 = vector.extract_strided_slice %23 {offsets = [0, 16], sizes = [8, 8], strides = [1, 1]} : vector<8x32xf32> to vector<8x8xf32>
    %cst_26 = arith.constant dense<0.000000e+00> : vector<8x8xf32>
    %74 = tpu.matmul %72, %73, %cst_26 {dimension_numbers = #tpu.dot_dimension_numbers<[1], [0], [0], [1], [0, 0, 1, 1], [], []>} : vector<8x8xf32>, vector<8x8xf32>, vector<8x8xf32> -> vector<8x8xf32>
    %75 = vector.extract_strided_slice %15 {offsets = [0, 24], sizes = [8, 8], strides = [1, 1]} : vector<8x32xf32> to vector<8x8xf32>
    %76 = vector.extract_strided_slice %19 {offsets = [0, 24], sizes = [8, 8], strides = [1, 1]} : vector<8x32xf32> to vector<8x8xf32>
    "tpu.trace_start"() <{level = 10 : i32, message = "qd,kd->qk"}> : () -> ()
    %cst_27 = arith.constant dense<0.000000e+00> : vector<8x8xf32>
    %77 = tpu.matmul %75, %76, %cst_27 {dimension_numbers = #tpu.dot_dimension_numbers<[1], [1], [0], [0], [0, 0, 1, 0], [], []>} : vector<8x8xf32>, vector<8x8xf32>, vector<8x8xf32> -> vector<8x8xf32>
    "tpu.trace_stop"() : () -> ()
    %78 = vector.broadcast %7 : vector<1x8xf32> to vector<8x8xf32>
    %79 = arith.addf %77, %78 : vector<8x8xf32>
    %cst_28 = arith.constant dense<0xFF800000> : vector<8xf32>
    %80 = vector.multi_reduction <maximumf>, %79, %cst_28 [1] : vector<8x8xf32> to vector<8xf32>
    %81 = vector.shape_cast %80 : vector<8xf32> to vector<8x1xf32>
    %82 = vector.broadcast %81 : vector<8x1xf32> to vector<8x8xf32>
    %83 = arith.subf %79, %82 : vector<8x8xf32>
    %84 = math.exp %83 : vector<8x8xf32>
    %cst_29 = arith.constant dense<0.000000e+00> : vector<8xf32>
    %85 = vector.multi_reduction <add>, %84, %cst_29 [1] : vector<8x8xf32> to vector<8xf32>
    %86 = vector.shape_cast %85 : vector<8xf32> to vector<8x1xf32>
    %87 = tpu.reciprocal %86 {approx = true} : vector<8x1xf32> -> vector<8x1xf32>
    %88 = vector.broadcast %87 : vector<8x1xf32> to vector<8x8xf32>
    %89 = arith.mulf %84, %88 : vector<8x8xf32>
    %90 = vector.extract_strided_slice %23 {offsets = [0, 24], sizes = [8, 8], strides = [1, 1]} : vector<8x32xf32> to vector<8x8xf32>
    %cst_30 = arith.constant dense<0.000000e+00> : vector<8x8xf32>
    %91 = tpu.matmul %89, %90, %cst_30 {dimension_numbers = #tpu.dot_dimension_numbers<[1], [0], [0], [1], [0, 0, 1, 1], [], []>} : vector<8x8xf32>, vector<8x8xf32>, vector<8x8xf32> -> vector<8x8xf32>
    %92 = tpu.concatenate %40, %57, %74, %91 in 1 : vector<8x8xf32>, vector<8x8xf32>, vector<8x8xf32>, vector<8x8xf32> -> vector<8x32xf32>
    %c0_31 = arith.constant 0 : index
    %c0_32 = arith.constant 0 : index
    %93 = vector.load %arg7[%c0_31, %c0_32] : memref<32x32xf32, #tpu.memory_space<vmem>>, vector<32x32xf32>
    %cst_33 = arith.constant dense<0.000000e+00> : vector<8x32xf32>
    %94 = tpu.matmul %92, %93, %cst_33 {dimension_numbers = #tpu.dot_dimension_numbers<[1], [0], [0], [1], [0, 0, 1, 1], [], []>} : vector<8x32xf32>, vector<32x32xf32>, vector<8x32xf32> -> vector<8x32xf32>
    %c0_34 = arith.constant 0 : index
    %c0_35 = arith.constant 0 : index
    %95 = vector.load %arg8[%c0_34, %c0_35] : memref<1x32xf32, #tpu.memory_space<vmem>>, vector<1x32xf32>
    %96 = vector.broadcast %95 : vector<1x32xf32> to vector<8x32xf32>
    %97 = arith.addf %94, %96 : vector<8x32xf32>
    %c0_36 = arith.constant 0 : index
    %c0_37 = arith.constant 0 : index
    %c0_38 = arith.constant 0 : index
    %98 = vector.load %arg9[%c0_36, %c0_37, %c0_38] : memref<1x8x32xf32, #tpu.memory_space<vmem>>, vector<1x8x32xf32>
    %99 = vector.shape_cast %98 : vector<1x8x32xf32> to vector<8x32xf32>
    %100 = vector.shape_cast %97 : vector<8x32xf32> to vector<1x8x32xf32>
    tpu.vector_store %arg9[%c0_36, %c0_37, %c0_38], %100 {strides = array<i32>} : memref<1x8x32xf32, #tpu.memory_space<vmem>>, vector<1x8x32xf32>,
    return
  }
  func.func @transform_0(%arg0: i32) -> (i32, i32, i32) {
    %c0_i32 = arith.constant 0 : i32
    %c0_i32_0 = arith.constant 0 : i32
    %c0_i32_1 = arith.constant 0 : i32
    return %arg0, %c0_i32, %c0_i32_0 : i32, i32, i32
  }
  func.func @transform_1(%arg0: i32) -> (i32, i32, i32) {
    %c0_i32 = arith.constant 0 : i32
    %c0_i32_0 = arith.constant 0 : i32
    %c0_i32_1 = arith.constant 0 : i32
    return %arg0, %c0_i32, %c0_i32_0 : i32, i32, i32
  }
  func.func @transform_2(%arg0: i32) -> (i32, i32, i32) {
    %c0_i32 = arith.constant 0 : i32
    %c0_i32_0 = arith.constant 0 : i32
    %c0_i32_1 = arith.constant 0 : i32
    return %arg0, %c0_i32, %c0_i32_0 : i32, i32, i32
  }
  func.func @transform_3(%arg0: i32) -> (i32, i32, i32) {
    %c0_i32 = arith.constant 0 : i32
    %c0_i32_0 = arith.constant 0 : i32
    %c0_i32_1 = arith.constant 0 : i32
    return %arg0, %c0_i32, %c0_i32_0 : i32, i32, i32
  }
  func.func @transform_4(%arg0: i32) -> (i32, i32) {
    %c0_i32 = arith.constant 0 : i32
    %c0_i32_0 = arith.constant 0 : i32
    %c0_i32_1 = arith.constant 0 : i32
    return %c0_i32, %c0_i32_0 : i32, i32
  }
  func.func @transform_5(%arg0: i32) -> (i32, i32) {
    %c0_i32 = arith.constant 0 : i32
    %c0_i32_0 = arith.constant 0 : i32
    %c0_i32_1 = arith.constant 0 : i32
    return %c0_i32, %c0_i32_0 : i32, i32
  }
  func.func @transform_6(%arg0: i32) -> (i32, i32) {
    %c0_i32 = arith.constant 0 : i32
    %c0_i32_0 = arith.constant 0 : i32
    %c0_i32_1 = arith.constant 0 : i32
    return %c0_i32, %c0_i32_0 : i32, i32
  }
  func.func @transform_7(%arg0: i32) -> (i32, i32) {
    %c0_i32 = arith.constant 0 : i32
    %c0_i32_0 = arith.constant 0 : i32
    %c0_i32_1 = arith.constant 0 : i32
    return %c0_i32, %c0_i32_0 : i32, i32
  }
  func.func @transform_8(%arg0: i32) -> (i32, i32, i32) {
    %c0_i32 = arith.constant 0 : i32
    %c0_i32_0 = arith.constant 0 : i32
    %c0_i32_1 = arith.constant 0 : i32
    return %arg0, %c0_i32, %c0_i32_0 : i32, i32, i32
  }
}

</mosaic_0001>

<bundles_post_ra>
// kernel: tpu_custom_call.1
= control target key start
LH: loop header
LB: loop body
LE: loop exit
PB: predicated region body
PF: predicated region fallthrough
CT: control target
= control target key end

     0   :  { %s1663_s0 = inlined_call_operand.hbm [shape: f32[2,8,32], index: 0, kind: input, shape index: {}]   ;;  %s1664_s1 = inlined_call_operand.hbm [shape: f32[2,8,32], index: 1, kind: input, shape index: {}]   ;;  %s1665_s2 = inlined_call_operand.hbm [shape: f32[2,8,32], index: 2, kind: input, shape index: {}]   ;;  %s1666_s3 = inlined_call_operand.vmem [shape: f32[2,1,8], index: 3, kind: input, shape index: {}]   ;;  %s1667_s4 = inlined_call_operand.hbm [shape: f32[32,96], index: 4, kind: input, shape index: {}]   ;;  %s1668_s5 = inlined_call_operand.vmem [shape: f32[1,96], index: 5, kind: input, shape index: {}]   ;;  %s1669_s6 = inlined_call_operand.hbm [shape: f32[32,32], index: 6, kind: input, shape index: {}]   ;;  %s1670_s7 = inlined_call_operand.vmem [shape: f32[1,32], index: 7, kind: input, shape index: {}]   ;;  %s1671_s8 = inlined_call_operand.hbm [shape: f32[2,8,32], index: 8, kind: output, shape index: {}]  }
   0x1   :  { %1681 = sst [smem:[#allocation21_spill]] %s1664_s1 }
   0x2   :  { %1682 = sst [smem:[#allocation22_spill]] %s1667_s4 }
   0x3   :  { %1683 = sst [smem:[#allocation23_spill]] %s1670_s7 }
   0x4   :  { %13 = vsyncpa [#allocation3], 0 }
   0x5   :  { %15 = vsyncpa [#allocation3 + $0x1], 0 }
   0x6   :  { %16 = vsyncpa [#allocation6], 0 }
   0x7   :  { %18 = vsyncpa [#allocation6 + $0x1], 0 }
   0x8   :  { %19 = vsyncpa [#allocation9], 0 }
   0x9   :  { %20 = vsyncpa [#allocation4], 0 }
   0xa   :  { %22 = vsyncpa [#allocation4 + $0x1], 0  ;;  %s1406_s27 = smov 0   ;;  %s1408_s28 = smov 0  }
   0xb   :  { %s1410_s29 = smov 0   ;;  %s1412_s30 = smov 0  }
   0xc LB: > { %1684 = sst [smem:[#allocation16_spill]] %s1329_s27  ;;  %s1430_s12 = sadd.s32 4294967295, %s1341_s30   ;;  %s1341_s30 = sphi %s1412_s30, %s1707_s30   ;;  %s1337_s29 = sphi %s1410_s29, %s1711_s29   ;;  %s1333_s28 = sphi %s1408_s28, %s1710_s28   ;;  %s1329_s27 = sphi %s1406_s27, %s1709_s27  }
   0xd   : > { %1685 = sst [smem:[#allocation17_spill]] %s1341_s30  ;;  %p968_p0 = scmp.ge.s32.totalorder %s1341_s30, 1 }
   0xe   : > { %s1686_s4 = sld [smem:[#allocation22_spill]]  ;;  %p1680_p1 = scmp.eq.s32.totalorder %s1430_s12, 0 }
   0xf   : > { %p247_p2 = scmp.lt.s32.totalorder %s1341_s30, 3  ;;  %s1343_s14 = smov [#allocation8]  }
  0x10   : > { %s260_s15 = sshll.u32 %s1343_s14, 4  ;;  %s1672_s17 = smov 128   ;;  %s261_s15 = int_to_ptr.vmem [resolvable:$true] %s260_s15 }
  0x11   : > { %p1435_p3 = pnand %p968_p0, %p247_p2  ;;  %s1673_s18 = smov 8  }
  0x12   : > { %s967_s19 = sadd.s32 4294967294, %s1341_s30   ;;  %s1455_s20 = sadd.s32 1, %s1341_s30  }
  0x13   : > { %p1021_p4 = pneg %p1435_p3  ;;  %1689 = sst [smem:[#allocation18_spill]] %s1455_s20 }
  0x14   : > { %s258_s11 = sshll.u32 %s1686_s4, 4  ;;  %s35_s21 = sadd.s32 1, %s1337_s29  ;;  %s259_s11 = int_to_ptr.hbm [resolvable:$true] %s258_s11 }
  0x15   : > { %p1444_p6 = pnand %p1021_p4, %p1680_p1  ;;  %s32_s22 = ssub.s32 %s1341_s30, %s1455_s20 }
  0x16   : > { %p42_p7 = scmp.ne.s32.totalorder %s1337_s29, %s1333_s28  ;;  %p33_p8 = scmp.eq.s32.totalorder %s32_s22, 0 }
  0x17   : > { %1024 = dma.hbm_to_vmem [thread:$0]  (!%p1444_p6), %s259_s11, 512, %s261_s15, [#allocation9], %s1672_s17, %s1672_s17, %s1673_s18  }
  0x18   : > { %p43_p9 = scmp.eq.s32.totalorder %s1341_s30, 0  ;;  %p48_p10 = scmp.ne.s32.totalorder %s1333_s28, %s1329_s27 }
  0x19   : > { %p234_p11 = scmp.eq.s32.totalorder %s1430_s12, 1  ;;  %p240_p2 = scmp.eq.s32.totalorder %s967_s19, 1 }
  0x1a   : > { %s1467_s23 = scalar_select %p33_p8, %s1337_s29, %s35_s21  }
  0x1b   : > { %p44_p12 = por %p43_p9, %p42_p7  ;;  %p1471_p13 = por %p1680_p1, %p48_p10 }
  0x1c   : > { %1690 = sst [smem:[#allocation19_spill]] %s1467_s23  ;;  %p1475_p0 = por %p234_p11, %p42_p7 }
  0x1d   : > { %p1044_p4 = scmp.lt.s32.totalorder %s1341_s30, 2  ;;  %s1674_s26 = sand.u32 1, %s1337_s29  }
  0x1e   : > { %p1481_p5 = por %p240_p2, %p48_p10  ;;  %s1487_s10 = sshll.u32 %s1674_s26, 3 }
  0x1f   : > { %s1490_s11 = sshll.u32 %s1341_s30, 3  ;;  %p1492_p8 = pnand %p1044_p4, %p44_p12 }
  0x20   : > { %s1693_s9 = scalar_select %p1481_p5, 1, 0 }
  0x21   : > { %s313_s15 = sand.u32 1, %s1341_s30   ;;  %s1696_s1 = sld [smem:[#allocation21_spill]] }
  0x22   : > { %1694 = sst [smem:[#allocation20_spill]] %s1693_s9  ;;  %s317_s17 = scalar_lea.vmem [#allocation5], %s1487_s10 }
  0x23   : > { %s325_s18 = sshll.u32 %s317_s17, 4  ;;  %s275_s20 = sshll.u32 %s1669_s6, 4  ;;  %s326_s18 = int_to_ptr.vmem [resolvable:$true] %s325_s18  ;;  %s276_s20 = int_to_ptr.hbm [resolvable:$true] %s275_s20 }
  0x24   : > { %s1505_s9 = scalar_lea.sflag [#allocation6], %s313_s15  ;;  %p1151_p9 = pneg %p1492_p8 }
  0x27   : > { %s321_s22 = scalar_lea.hbm %s1696_s1, %s1490_s11  ;;  %s1154_s21 = scalar_lea.hbm %s1696_s1, 16 }
  0x28   : > { %s323_s4 = sshll.u32 %s321_s22, 4  ;;  %s324_s4 = int_to_ptr.hbm [resolvable:$true] %s323_s4 }
  0x29   : > { %s1147_s27 = sshra.s32 %s324_s4, 4  ;;  %s1148_s27 = int_to_ptr.hbm [resolvable:$true] %s1147_s27 }
  0x2a   : > { %s1149_s7 = scalar_lea.hbm %s1148_s27, 8  ;;  %p1155_p12 = scmp.lt.s32.totalorder %s1148_s27, %s1696_s1 }
  0x2b   : > { %p1150_p7 = scmp.ne.s32.totalorder %s1148_s27, %s1149_s7  ;;  %p1156_p2 = scmp.lt.s32.totalorder %s1154_s21, %s1149_s7 }
  0x2d   : > { %p1152_p10 = pnand %p1151_p9, %p1150_p7  ;;  %p1157_p4 = por %p1156_p2, %p1155_p12 }
  0x2f   : > { %p1153_p11 = pneg %p1152_p10 }
  0x31   : > { %p1158_p1 = pnand %p1157_p4, %p1153_p11 }
  0x33   : > { %1161 = shalt.err (!%p1158_p1)
}
  0x34   : > { %1034 = dma.hbm_to_vmem [thread:$0]  (!%p1492_p8), %s324_s4, 128, %s326_s18, %s1505_s9  }
  0x35   : > { %s1346_s23 = smov [#allocation10]   ;;  %s1697_s30 = smov 8  }
  0x36   : > { %s277_s26 = sshll.u32 %s1346_s23, 4  ;;  %s1698_s27 = smov 128   ;;  %s278_s26 = int_to_ptr.vmem [resolvable:$true] %s277_s26 }
  0x37   : > { %1027 = dma.hbm_to_vmem [thread:$0]  (!%p1444_p6), %s276_s20, 512, %s278_s26, [#allocation9], %s1698_s27, %s1698_s27, %s1697_s30  }
  0x38   : > { %s302_s17 = scalar_lea.hbm %s1663_s0, %s1490_s11  ;;  %s298_s19 = scalar_lea.vmem [#allocation2], %s1487_s10 }
  0x39   : > { %s306_s21 = sshll.u32 %s298_s19, 4  ;;  %s304_s22 = sshll.u32 %s302_s17, 4  ;;  %s307_s21 = int_to_ptr.vmem [resolvable:$true] %s306_s21  ;;  %s305_s22 = int_to_ptr.hbm [resolvable:$true] %s304_s22 }
  0x3a   : > { %s1699_s4 = sand.u32 1, %s1337_s29   ;;  %s1207_s1 = sshra.s32 %s305_s22, 4  ;;  %s1208_s1 = int_to_ptr.hbm [resolvable:$true] %s1207_s1 }
  0x3b   : > { %s295_s18 = scalar_lea.sflag [#allocation3], %s1699_s4  ;;  %s1209_s23 = scalar_lea.hbm %s1208_s1, 8 }
  0x3c   : > { %p1210_p1 = scmp.ne.s32.totalorder %s1208_s1, %s1209_s23  ;;  %s1214_s26 = scalar_lea.hbm %s1663_s0, 16 }
  0x3d   : > { %p1215_p6 = scmp.lt.s32.totalorder %s1208_s1, %s1663_s0  ;;  %p1216_p11 = scmp.lt.s32.totalorder %s1214_s26, %s1209_s23 }
  0x3e   : > { %p1212_p7 = pnand %p1210_p1, %p1151_p9 }
  0x3f   : > { %p1217_p12 = por %p1216_p11, %p1215_p6 }
  0x40   : > { %p1213_p10 = pneg %p1212_p7 }
  0x42   : > { %p1218_p2 = pnand %p1217_p12, %p1213_p10 }
  0x44   : > { %1221 = shalt.err (!%p1218_p2)
}
  0x45   : > { %1031 = dma.hbm_to_vmem [thread:$0]  (!%p1492_p8), %s305_s22, 128, %s307_s21, %s295_s18  }
  0x46   : > { %s340_s17 = scalar_lea.hbm %s1665_s2, %s1490_s11  ;;  %s336_s19 = scalar_lea.vmem [#allocation7], %s1487_s10 }
  0x47   : > { %s344_s4 = sshll.u32 %s336_s19, 4  ;;  %s342_s16 = sshll.u32 %s340_s17, 4  ;;  %s345_s4 = int_to_ptr.vmem [resolvable:$true] %s344_s4  ;;  %s343_s16 = int_to_ptr.hbm [resolvable:$true] %s342_s16 }
  0x48   : > { %s1237_s1 = sshra.s32 %s343_s16, 4  ;;  %s1244_s21 = scalar_lea.hbm %s1665_s2, 16  ;;  %s1238_s1 = int_to_ptr.hbm [resolvable:$true] %s1237_s1 }
  0x49   : > { %s1239_s23 = scalar_lea.hbm %s1238_s1, 8  ;;  %p1245_p10 = scmp.lt.s32.totalorder %s1238_s1, %s1665_s2 }
  0x4a   : > { %p1240_p4 = scmp.ne.s32.totalorder %s1238_s1, %s1239_s23  ;;  %p1246_p6 = scmp.lt.s32.totalorder %s1244_s21, %s1239_s23 }
  0x4c   : > { %p1242_p1 = pnand %p1240_p4, %p1151_p9  ;;  %p1247_p11 = por %p1246_p6, %p1245_p10 }
  0x4e   : > { %p1243_p7 = pneg %p1242_p1 }
  0x50   : > { %p1248_p12 = pnand %p1247_p11, %p1243_p7 }
  0x52   : > { %1251 = shalt.err (!%p1248_p12)
}
  0x53   : > { %1037 = dma.hbm_to_vmem [thread:$0]  (!%p1492_p8), %s343_s16, 128, %s345_s4, %s1505_s9  }
  0x54   : > { %359 = sbr.rel (%p1435_p3) target bundleno = 1531 (0x5fb), region = 52  ;;  %s1564_s10 = sand.u32 (!%p1435_p3), 1, %s1333_s28  }
  0x55   : > { %s1567_s11 = sshll.u32 (!%p1435_p3), %s1564_s10, 3  ;;  %s362_s30 = scalar_lea.sflag (!%p1435_p3), [#allocation3], %s1564_s10 }
  0x56   : > { %s365_s27 = scalar_lea.vmem (!%p1435_p3), [#allocation2], %s1567_s11 }
  0x59   : > { %1312 = dma.done.wait (%p1471_p13), %s362_s30, 128  }
  0x5a   : > { %1314 = vsyncadd (%p1471_p13), %s362_s30, 4294967168  ;;  %s371_s13 = sand.u32 1, %s1430_s12   ;;  %s375_s14 = scalar_lea.vmem [#allocation5], %s1567_s11 }
  0x5b   : > { %s372_s9 = scalar_lea.sflag [#allocation6], %s371_s13 }
  0x5c   : > { %1316 = dma.done.wait (%p1471_p13), %s372_s9, 256  }
  0x5d   : > { %1318 = vsyncadd (%p1471_p13), %s372_s9, 4294967040  ;;  %s385_s7 = scalar_lea.vmem [#allocation7], %s1567_s11  ;;  %p1700_p3 = scmp.eq.s32.totalorder %s1430_s12, 0 }
  0x5f   : > { %1320 = dma.done.wait (%p1700_p3), [#allocation9], 1024   ;;  %p1701_p8 = pmov %p1700_p3 }
  0x60   : > { %v452_v0 = vld [vmem:[#allocation8 + $0x18] sm:$0xff]  ;;  %v451_v1 = vld [vmem:[#allocation8 + $0x10] sm:$0xff]  ;;  %v450_v2 = vld [vmem:[#allocation8 + $0x8] sm:$0xff]  ;;  %vm453_vm0 = vcmask 261120   ;;  %s1347_s17 = smov 120   ;;  %p442_p13 = scmp.lt.s32.totalorder %s1430_s12, 1 }
  0x61   : > { %1322 = vsyncadd (%p1701_p8), [#allocation9], 4294966272  ;;  %475 = vmatpush.msra.mxu0 %v452_v0  ;;  %v449_v3 = vld [vmem:[#allocation8] sm:$0xff]  ;;  %v445_v4 = vld [vmem:[%s365_s27] sm:$0xff]  ;;  %s1348_s19 = smov 96   ;;  %s1349_s20 = smov 88  }
  0x62   : > { %v446_v5 = vld [vmem:[%s375_s14] sm:$0xff]  ;;  %v447_v6 = vld [vmem:[%s385_s7] sm:$0xff]  ;;  %s443_s4 = scalar_select %p442_p13, %s1430_s12, 1  ;;  %vm502_vm1 = vcmask 64512   ;;  %vm774_vm2 = vcmask 130048   ;;  %vm776_vm3 = vcmask 195584  }
  0x63   : > { %476 = vmatpush.msra.mxu0 %v451_v1  ;;  %v1098_v7 = vld [vmem:[%s1668_s5] ss:$0 sm:$0xff]  ;;  %s1350_s26 = smov 64   ;;  %s1351_s21 = smov 56  }
  0x64   : > { %s444_s23 = scalar_lea.vmem %s1666_s3, %s443_s4  ;;  %s1352_s22 = smov 72  }
  0x65   : > { %477 = vmatpush.msra.mxu0 %v450_v2  ;;  %v1099_v17 = vld [vmem:[%s444_s23] ss:$0 sm:$0xff]  ;;  %s1353_s18 = smov 80   ;;  %s1354_s30 = smov 112  }
  0x66   : > { %s1355_s27 = smov 104   ;;  %s1356_s13 = smov 40  }
  0x67   : > { %478 = vmatpush.msra.mxu0 %v449_v3  ;;  %s1357_s9 = smov 8   ;;  %s1358_s14 = smov 48  }
  0x68   : > { %985 = vmatmul.msk.f32.vlgmr.msra.gmra.mxu0 %vm453_vm0, %v445_v4  ;;  %s1359_s7 = smov 24   ;;  %s1360_s24 = smov 16  }
  0x69   : > { %s1002_s15 = sshll.u32 %s1430_s12, 3  ;;  %s1702_s23 = sld [smem:[#allocation23_spill]] }
  0x6a   : > { %s821_s4 = scalar_lea.hbm %s1671_s8, %s1002_s15 }
  0x70   : > { %986 = vmatmul.msk.f32.gmra.mxu0 %vm453_vm0, %v446_v5 }
  0x78   : > { %987 = vmatmul.msk.f32.gmra.mxu0 %vm453_vm0, %v447_v6 }
  0xe5   : > { %v480_v8 = vpop.f32.mrf.mxu0 }
  0xe6   : > { %v493_v9 = vadd.f32 %v1098_v7, %v480_v8 }
  0xe8   : > { %566 = vrot.lane.b32.xlu1 %v493_v9, %s1347_s17 }
  0xed   : > { %v483_v10 = vpop.f32.mrf.mxu0 }
  0xee   : > { %v494_v11 = vadd.f32 %v1098_v7, %v483_v10  ;;  %v781_v10 = vld [vmem:[#allocation10 + $0x18] sm:$0xff] }
  0xf0   : > { %500 = vrot.lane.b32.xlu0 %v494_v11, %s1348_s19 }
  0xf5   : > { %v486_v12 = vpop.f32.mrf.mxu0 }
  0xf6   : > { %v1597_v13 = vadd.f32 %v1098_v7, %v486_v12  ;;  %v779_v12 = vld [vmem:[#allocation10 + $0x8] sm:$0xff] }
  0xf8   : > { %568 = vrot.lane.b32.xlu0 %v494_v11, %s1349_s20  ;;  %540 = vrot.lane.b32.xlu2 %v1597_v13, %s1350_s26  ;;  %s441_s20 = scalar_lea.vmem [#allocation11], %s1567_s11  ;;  %s1287_s11 = scalar_lea.hbm %s1671_s8, 16 }
  0xf9   : > { %s823_s26 = sshll.u32 %s441_s20, 4  ;;  %s824_s26 = int_to_ptr.vmem [resolvable:$true] %s823_s26 }
 0x100   : > { %605 = vrot.lane.b32.xlu2 %v1597_v13, %s1351_s21  ;;  %s825_s21 = sshll.u32 %s821_s4, 4  ;;  %s826_s21 = int_to_ptr.hbm [resolvable:$true] %s825_s21 }
 0x101   : > { %s1281_s12 = sshra.s32 %s826_s21, 4  ;;  %s1282_s12 = int_to_ptr.hbm [resolvable:$true] %s1281_s12 }
 0x102   : > { %p1288_p1 = scmp.lt.s32.totalorder %s1282_s12, %s1671_s8 }
 0x152   : > { %v541_v21 = vpop.permute.xlu2 %540 }
 0x153   : > { %561 = vmatpush.msra.mxu2 %v541_v21 }
 0x15a   : > { %v567_v16 = vpop.permute.xlu1 %566  ;;  %v606_v25 = vpop.permute.xlu2 %605 }
 0x15b   : > { %626 = vmatpush.msrb.mxu2 %v606_v25 }
 0x162   : > { %v501_v14 = vpop.permute.xlu0 %500 }
 0x163   : > { %988 = vmatpush.xpose.msk.msra.mxu1 %vm502_vm1, %v501_v14 }
 0x166   : > { %989 = vmatmul.msk.f32.vlgmr.msra.gmra.mxu1 %vm502_vm1, %v493_v9 }
 0x16a   : > { %v569_v15 = vpop.permute.xlu0 %568 }
 0x16b   : > { %991 = vmatpush.xpose.msk.msra.mxu3 %vm502_vm1, %v569_v15 }
 0x16e   : > { %992 = vmatmul.msk.f32.vlgmr.msra.gmra.mxu3 %vm502_vm1, %v567_v16 }
 0x1e3   : > { %v525_v18 = vpop.f32.mrf.mxu1 }
 0x1e4   : > { %v526_v19 = vadd.f32 %v1099_v17, %v525_v18 }
 0x1e6   : > { %v528_v20 = vsel %vm502_vm1, %v526_v19, -inf }
 0x1e7   : > { %529 = vmax.xlane.f32.xlu1 %v528_v20  ;;  %v1100_v20 = vld [vmem:[%s1702_s23] ss:$0 sm:$0xff] }
 0x1f1   : > { %v591_v22 = vpop.f32.mrf.mxu3 }
 0x1f2   : > { %v592_v23 = vadd.f32 %v1099_v17, %v591_v22 }
 0x1f4   : > { %v594_v24 = vsel %vm502_vm1, %v592_v23, -inf }
 0x1f5   : > { %595 = vmax.xlane.f32.xlu2 %v594_v24 }
 0x200   : > { %698 = vrot.lane.b32.xlu1 %v494_v11, %s1352_s22  ;;  %s811_s22 = scalar_lea.sflag [#allocation4], %s1564_s10 }
 0x20d   : > { %633 = vrot.lane.b32.xlu2 %v494_v11, %s1353_s18  ;;  %v780_v11 = vld [vmem:[#allocation10 + $0x10] sm:$0xff]  ;;  %s1283_s18 = scalar_lea.hbm %s1282_s12, 8 }
 0x20e   : > { %p1284_p9 = scmp.ne.s32.totalorder %s1282_s12, %s1283_s18  ;;  %p1289_p7 = scmp.lt.s32.totalorder %s1287_s11, %s1283_s18 }
 0x210   : > { %p1285_p2 = pnand %p1284_p9, %p1475_p0  ;;  %p1290_p10 = por %p1289_p7, %p1288_p1 }
 0x212   : > { %p1286_p4 = pneg %p1285_p2 }
 0x214   : > { %p1291_p6 = pnand %p1290_p10, %p1286_p4 }
 0x25a   : > { %v530_v26 = vpop.xlane.xlu1 %529 }
 0x25b   : > { %v531_v27 = vsub.f32 %v526_v19, %v530_v26 }
 0x25d   : > { %v532_v28 = vmul.f32 1.442695, %v531_v27 }
 0x25f   : > { %1101 = vpow2.f32 %v532_v28 }
 0x265   : > { %v1102_v29 = vpop.eup %1101 }
 0x266   : > { %v534_v30 = vsel %vm502_vm1, %v1102_v29, 0.0 }
 0x267   : > { %535 = vadd.xlane.f32.xlu2 %v534_v30 }
 0x268   : > { %v596_v31 = vpop.xlane.xlu2 %595 }
 0x269   : > { %v597_v32 = vsub.f32 %v592_v23, %v596_v31 }
 0x26b   : > { %v598_v33 = vmul.f32 1.442695, %v597_v32 }
 0x26d   : > { %1103 = vpow2.f32 %v598_v33 }
 0x270   : > { %v634_v34 = vpop.permute.xlu2 %633 }
 0x271   : > { %994 = vmatpush.xpose.msk.msrb.mxu1 %vm502_vm1, %v634_v34 }
 0x272   : > { %v699_v41 = vpop.permute.xlu1 %698 }
 0x273   : > { %v1104_v35 = vpop.eup %1103 }
 0x274   : > { %v600_v36 = vsel %vm502_vm1, %v1104_v35, 0.0 }
 0x275   : > { %601 = vadd.xlane.f32.xlu0 %v600_v36 }
 0x27f   : > { %631 = vrot.lane.b32.xlu2 %v493_v9, %s1354_s30 }
 0x289   : > { %696 = vrot.lane.b32.xlu0 %v493_v9, %s1355_s27 }
 0x2da   : > { %v536_v37 = vpop.xlane.xlu2 %535 }
 0x2db   : > { %1105 = vrcp.f32 %v536_v37 }
 0x2e1   : > { %v1106_v38 = vpop.eup %1105 }
 0x2e2   : > { %v632_v39 = vpop.permute.xlu2 %631  ;;  %v538_v40 = vmul.f32 %v1106_v38, %v1102_v29 }
 0x2e3   : > { %995 = vmatmul.msk.f32.vlgmr.msrb.gmra.mxu1 %vm502_vm1, %v632_v39 }
 0x2e4   : > { %990 = vmatmul.msk.f32.vlgmr.msra.gmra.mxu2 %vm502_vm1, %v538_v40 }
 0x2e5   : > { %997 = vmatpush.xpose.msk.msra.mxu2 %vm502_vm1, %v699_v41 }
 0x2e8   : > { %v602_v42 = vpop.xlane.xlu0 %601 }
 0x2e9   : > { %1107 = vrcp.f32 %v602_v42 }
 0x2ef   : > { %v1108_v43 = vpop.eup %1107 }
 0x2f0   : > { %v604_v44 = vmul.f32 %v1108_v43, %v1104_v35 }
 0x2f2   : > { %993 = vmatmul.msk.f32.vlgmr.msrb.gmra.mxu2 %vm502_vm1, %v604_v44 }
 0x2fb   : > { %v697_v45 = vpop.permute.xlu0 %696 }
 0x2fc   : > { %998 = vmatmul.msk.f32.vlgmr.msra.gmra.mxu2 %vm502_vm1, %v697_v45 }
 0x360   : > { %v656_v46 = vpop.f32.mrf.mxu1 }
 0x361   : > { %v657_v47 = vadd.f32 %v1099_v17, %v656_v46 }
 0x363   : > { %v659_v48 = vsel %vm502_vm1, %v657_v47, -inf }
 0x364   : > { %660 = vmax.xlane.f32.xlu2 %v659_v48 }
 0x367   : > { %v563_v49 = vpop.f32.mrf.mxu2 }
 0x375   : > { %v628_v50 = vpop.f32.mrf.mxu2 }
 0x37f   : > { %v721_v51 = vpop.f32.mrf.mxu2 }
 0x380   : > { %v722_v52 = vadd.f32 %v1099_v17, %v721_v51 }
 0x382   : > { %v724_v53 = vsel %vm502_vm1, %v722_v52, -inf }
 0x383   : > { %725 = vmax.xlane.f32.xlu1 %v724_v53 }
 0x39c   : > { %735 = vrot.lane.b32.xlu1 %v1597_v13, %s1356_s13 }
 0x3d7   : > { %v661_v54 = vpop.xlane.xlu2 %660 }
 0x3d8   : > { %v662_v55 = vsub.f32 %v657_v47, %v661_v54 }
 0x3da   : > { %v663_v56 = vmul.f32 1.442695, %v662_v55 }
 0x3dc   : > { %1109 = vpow2.f32 %v663_v56 }
 0x3e2   : > { %v1110_v57 = vpop.eup %1109 }
 0x3e3   : > { %v665_v58 = vsel %vm502_vm1, %v1110_v57, 0.0 }
 0x3e4   : > { %666 = vadd.xlane.f32.xlu0 %v665_v58 }
 0x3f6   : > { %v726_v59 = vpop.xlane.xlu1 %725 }
 0x3f7   : > { %v727_v60 = vsub.f32 %v722_v52, %v726_v59 }
 0x3f8   : > { %762 = vrot.lane.b32.xlu0 %v628_v50, %s1357_s9 }
 0x3f9   : > { %v728_v61 = vmul.f32 1.442695, %v727_v60 }
 0x3fb   : > { %1111 = vpow2.f32 %v728_v61 }
 0x401   : > { %v1112_v62 = vpop.eup %1111 }
 0x402   : > { %v730_v63 = vsel %vm502_vm1, %v1112_v62, 0.0 }
 0x403   : > { %731 = vadd.xlane.f32.xlu2 %v730_v63 }
 0x40e   : > { %v736_v0 = vpop.permute.xlu1 %735 }
 0x40f   : > { %756 = vmatpush.msra.mxu1 %v736_v0 }
 0x41b   : > { %670 = vrot.lane.b32.xlu2 %v1597_v13, %s1358_s14  ;;  %v778_v13 = vld [vmem:[#allocation10] sm:$0xff] }
 0x457   : > { %v667_v1 = vpop.xlane.xlu0 %666 }
 0x458   : > { %1113 = vrcp.f32 %v667_v1 }
 0x45e   : > { %v1114_v3 = vpop.eup %1113 }
 0x45f   : > { %v669_v7 = vmul.f32 %v1114_v3, %v1110_v57 }
 0x46a   : > { %v763_v14 = vpop.permute.xlu0 %762 }
 0x46b   : > { %v773_v16 = vsel %vm502_vm1, %v563_v49, %v763_v14 }
 0x476   : > { %v732_v2 = vpop.xlane.xlu2 %731 }
 0x477   : > { %1115 = vrcp.f32 %v732_v2 }
 0x47d   : > { %v1116_v4 = vpop.eup %1115 }
 0x47e   : > { %v734_v5 = vmul.f32 %v1116_v4, %v1112_v62  ;;  %v671_v6 = vpop.permute.xlu2 %670 }
 0x47f   : > { %691 = vmatpush.msrb.mxu3 %v671_v6 }
 0x480   : > { %996 = vmatmul.msk.f32.vlgmr.msrb.gmra.mxu3 %vm502_vm1, %v669_v7  ;;  %999 = vmatmul.msk.f32.vlgmr.msra.gmra.mxu1 %vm502_vm1, %v734_v5 }
 0x481   : > { %801 = vmatpush.msra.mxu3 %v781_v10 }
 0x483   : > { %802 = vmatpush.msra.mxu3 %v780_v11 }
 0x485   : > { %803 = vmatpush.msra.mxu3 %v779_v12 }
 0x487   : > { %804 = vmatpush.msra.mxu3 %v778_v13 }
 0x4fd   : > { %v758_v8 = vpop.f32.mrf.mxu1 }
 0x4fe   : > { %770 = vrot.lane.b32.xlu0 %v758_v8, %s1359_s7 }
 0x503   : > { %v693_v9 = vpop.f32.mrf.mxu3 }
 0x504   : > { %766 = vrot.lane.b32.xlu2 %v693_v9, %s1360_s24 }
 0x55e   : > { %v767_v15 = vpop.permute.xlu2 %766 }
 0x55f   : > { %v775_v17 = vsel %vm774_vm2, %v773_v16, %v767_v15 }
 0x570   : > { %v771_v18 = vpop.permute.xlu0 %770 }
 0x571   : > { %v777_v19 = vsel %vm776_vm3, %v775_v17, %v771_v18 }
 0x572   : > { %1000 = vmatmul.msk.f32.vlgmr.msra.gmra.mxu3 %vm453_vm0, %v777_v19 }
 0x5f5   : > { %v806_v21 = vpop.f32.mrf.mxu3 }
 0x5f6   : > { %v807_v22 = vadd.f32 %v1100_v20, %v806_v21 }
 0x5f8   : > { %809 = vst.msk [vmem:[%s441_s20] sm:$0xff] %vm453_vm0, %v807_v22 }
 0x5f9   : > { %1294 = shalt.err (!%p1291_p6)
}
 0x5fa   : > { %1019 = dma.vmem_to_hbm [thread:$0]  (%p1475_p0), %s824_s26, 128, %s826_s21, %s811_s22  }
 0x5fb PF: > { %s1703_s10 = sld [smem:[#allocation16_spill]] }
 0x5fc   : > { %s1705_s7 = sld [smem:[#allocation17_spill]] }
 0x601   : > { %s837_s24 = sand.u32 1, %s1703_s10  }
 0x602   : > { %p1706_p11 = scmp.ge.s32.totalorder %s1705_s7, 2  ;;  %s838_s15 = scalar_lea.sflag [#allocation4], %s837_s24 }
 0x604   : > { %p1039_p12 = pnand %p1706_p11, %p1481_p5 }
 0x606   : > { %p1040_p3 = pneg %p1039_p12 }
 0x608   : > { %1324 = dma.done.wait (%p1040_p3), %s838_s15, 128  }
 0x609   : > { %1326 = vsyncadd (%p1040_p3), %s838_s15, 4294967168  ;;  %s1707_s30 = sld [smem:[#allocation18_spill]]  ;;  %s1709_s27 = smov %s1333_s28 }
 0x60a   : > { %s1708_s17 = sld [smem:[#allocation19_spill]]  ;;  %s1710_s28 = smov %s1337_s29 }
 0x60f   : > { %p25_p8 = scmp.ge.s32.totalorder %s1707_s30, 4  }
 0x610   : > { %s1711_s29 = smov %s1708_s17 }
 0x611   :  { %27 = sbr.rel (!%p25_p8) target bundleno = 12 (0xc), region = 132 }
 0x616   :  { %844 = vsyncpa [#allocation3], 1 }
 0x617   :  { %846 = vsyncpa [#allocation3 + $0x1], 1 }
 0x618   :  { %847 = vsyncpa [#allocation6], 1 }
 0x619   :  { %849 = vsyncpa [#allocation6 + $0x1], 1 }
 0x61a   :  { %850 = vsyncpa [#allocation9], 1 }
 0x61b   :  { %851 = vsyncpa [#allocation4], 1 }
 0x61c   :  { %853 = vsyncpa [#allocation4 + $0x1], 1 }

</bundles_post_ra>
